<compile_context>
chip_gen: v7x
topology: tpu7x:2x2x1
jax: 0.10.0
libtpu: 0.0.40
codegen_flags: <defaults>
</compile_context>

<pallas_src>
import functools

import jax
import jax.numpy as jnp
from jax.experimental import pallas as pl
from jax.experimental.pallas import tpu as pltpu


def _soft_triplet_kernel(*refs, margin, mid_hard, tm):
    if margin is None:
        (lab_col_ref, lab_row_ref, sq1_col_ref, sq1_row_ref, e1_ref,
         sq2_col_ref, sq2_row_ref, e2_ref, out_ref) = refs
    else:
        (lab_col_ref, lab_row_ref, sq1_col_ref, sq1_row_ref, e1_ref,
         out_ref) = refs

    n = e1_ref.shape[0]
    r0 = pl.multiple_of(pl.program_id(0) * tm, tm)

    # (TM, N) squared distances for this row stripe: ||a||^2 + ||b||^2 - 2<a,b>.
    e1_blk = e1_ref[pl.ds(r0, tm), :]                       # (TM, D) native dtype
    gram1 = jax.lax.dot_general(e1_blk, e1_ref[...], (((1,), (1,)), ((), ())),
                                preferred_element_type=jnp.float32)       # (TM, N)
    d2 = sq1_col_ref[...] + sq1_row_ref[...] - 2.0 * gram1                # (TM, N)

    sim = lab_col_ref[...] == lab_row_ref[...]              # (TM, N) bool
    col = jax.lax.broadcasted_iota(jnp.int32, (tm, n), 1)   # global column index

    # Select-based masking (one vsel each); sentinels dominate any real d^2.
    pos_masked = jnp.where(sim, d2, -1e30)
    neg_masked = jnp.where(sim, 1e30, d2)

    # Hard positive: largest squared distance among same-label samples.
    d2_ap = jnp.max(pos_masked, axis=1, keepdims=True)      # (TM, 1)
    need_idx = (margin is None) or mid_hard                 # indices only when used
    if need_idx:
        ap_idx = jnp.min(jnp.where(pos_masked == d2_ap, col, n),
                         axis=1, keepdims=True)             # (TM, 1)
    if mid_hard:
        pos2 = jnp.where(col == ap_idx, -1e30, pos_masked)  # drop the first pick
        d2_ap = jnp.max(pos2, axis=1, keepdims=True)
        if margin is None:
            ap_idx = jnp.min(jnp.where(pos2 == d2_ap, col, n),
                             axis=1, keepdims=True)

    # Hard negative: smallest squared distance among different-label samples.
    d2_an = jnp.min(neg_masked, axis=1, keepdims=True)      # (TM, 1)
    if margin is None:
        an_idx = jnp.min(jnp.where(neg_masked == d2_an, col, n),
                         axis=1, keepdims=True)

    # sqrt only of the selected values (matches torch clamp(min=1e-12).sqrt()).
    dist_ap = jnp.sqrt(jnp.maximum(d2_ap, 1e-12))
    dist_an = jnp.sqrt(jnp.maximum(d2_an, 1e-12))

    # log_softmax over the (ap, an) pair.
    m = jnp.maximum(dist_ap, dist_an)
    lse = m + jnp.log(jnp.exp(dist_ap - m) + jnp.exp(dist_an - m))
    log_p_ap = dist_ap - lse
    log_p_an = dist_an - lse

    if margin is not None:
        per = -margin * log_p_ap - (1.0 - margin) * log_p_an              # (TM, 1)
    else:
        # Reference (emb2) distances for the same (ap_idx, an_idx) pairs.
        e2_blk = e2_ref[pl.ds(r0, tm), :]
        gram2 = jax.lax.dot_general(e2_blk, e2_ref[...], (((1,), (1,)), ((), ())),
                                    preferred_element_type=jnp.float32)
        d2_ref = sq2_col_ref[...] + sq2_row_ref[...] - 2.0 * gram2        # (TM, N)
        # One-hot gather of the SQUARED ref distances; sqrt only the (TM,1) picks.
        d2_ap_ref = jnp.sum(jnp.where(col == ap_idx, d2_ref, 0.0),
                            axis=1, keepdims=True)
        d2_an_ref = jnp.sum(jnp.where(col == an_idx, d2_ref, 0.0),
                            axis=1, keepdims=True)
        dist_ap_ref = jnp.sqrt(jnp.maximum(d2_ap_ref, 1e-12))
        dist_an_ref = jnp.sqrt(jnp.maximum(d2_an_ref, 1e-12))
        mr = jnp.maximum(dist_ap_ref, dist_an_ref)
        ea = jnp.exp(dist_ap_ref - mr)
        en = jnp.exp(dist_an_ref - mr)
        s = ea + en
        inv = pl.reciprocal(s, approx=True)        # EUP vrcp (free slot)
        inv = inv * (2.0 - s * inv)                # one Newton step -> ~f32 exact
        per = -(ea * inv) * log_p_ap - (en * inv) * log_p_an              # (TM, 1)

    out_ref[...] = per


def _row_tile(n):
    # Largest divisor of n that is a multiple of 8 and <= 128; else the whole n
    # (full-extent blocks are always legal).
    for cand in range(min(n, 128), 7, -1):
        if cand % 8 == 0 and n % cand == 0:
            return cand
    return n


def soft_triplet_loss(emb1, emb2, label, *, margin=None,
                      normalize_feature=False, mid_hard=False):
    n, d = emb1.shape
    tm = _row_tile(n)
    grid = (n // tm,)

    def prep(e):
        # Optional F.normalize (x / max(||x||, 1e-12)) + squared row norms, done
        # once in the wrapper instead of once per grid step inside the kernel.
        ef = e.astype(jnp.float32)
        if normalize_feature:
            nrm = jnp.sqrt(jnp.sum(ef * ef, axis=1, keepdims=True))
            ef = ef / jnp.maximum(nrm, 1e-12)
            e = ef.astype(e.dtype)
        sq = jnp.sum(ef * ef, axis=1, keepdims=True)          # (N, 1) f32
        return e, sq

    emb1, sq1 = prep(emb1)
    lab_col = label.reshape(n, 1).astype(jnp.int32)
    lab_row = label.reshape(1, n).astype(jnp.int32)

    in_specs = [
        pl.BlockSpec((tm, 1), lambda i: (i, 0)),   # labels, column layout (blocked)
        pl.BlockSpec((1, n), lambda i: (0, 0)),    # labels, row layout (resident)
        pl.BlockSpec((tm, 1), lambda i: (i, 0)),   # ||e1||^2 column (blocked)
        pl.BlockSpec((1, n), lambda i: (0, 0)),    # ||e1||^2 row (resident)
        pl.BlockSpec((n, d), lambda i: (0, 0)),    # emb1 (resident; row block sliced in-kernel)
    ]
    inputs = [lab_col, lab_row, sq1, sq1.reshape(1, n), emb1]
    if margin is None:                              # emb2 only needed for the ref softmax
        emb2, sq2 = prep(emb2)
        in_specs += [
            pl.BlockSpec((tm, 1), lambda i: (i, 0)),
            pl.BlockSpec((1, n), lambda i: (0, 0)),
            pl.BlockSpec((n, d), lambda i: (0, 0)),
        ]
        inputs += [sq2, sq2.reshape(1, n), emb2]

    # Explicit VMEM budget: resident embeddings (assume double-buffered) plus the
    # (TM, N) f32 epilogue temporaries, clamped to the chip's physical VMEM.
    itemsize = jnp.dtype(emb1.dtype).itemsize
    n_emb = 1 if margin is not None else 2
    vmem_est = (2 * n_emb * n * d * itemsize
                + 14 * tm * n * 4
                + (2 << 20))
    try:
        phys = int(pltpu.get_tpu_info().vmem_capacity_bytes)
    except Exception:
        phys = 64 * 1024 * 1024                     # v7x-safe fallback
    cap = max(32 * 1024 * 1024, int(phys * 3 // 4))
    vmem_limit = int(min(max(2 * vmem_est, 32 * 1024 * 1024), cap))
    # TODO(synk): for N*D too large for resident embeddings (rare for reid batch
    # sizes) the column side should be K-looped / tiled over N as well.

    kernel = functools.partial(
        _soft_triplet_kernel, margin=margin, mid_hard=mid_hard, tm=tm)

    per_row = pl.pallas_call(
        kernel,
        grid=grid,
        in_specs=in_specs,
        out_specs=pl.BlockSpec((tm, 1), lambda i: (i, 0)),
        out_shape=jax.ShapeDtypeStruct((n, 1), jnp.float32),
        compiler_params=pltpu.CompilerParams(
            dimension_semantics=("parallel",),
            vmem_limit_bytes=vmem_limit),
    )(*inputs)

    # (-ref * logp).mean(0).sum()  ==  mean over rows of per-row pair sums;
    # the margin path's .mean() is the same sum/N reduction.
    return jnp.sum(per_row) / n


def _reference_loss(emb1, emb2, label, margin=None, normalize_feature=False):
    # Pure-JAX mirror of the PyTorch forward (mid_hard=False).
    def normalize(x):
        nrm = jnp.sqrt(jnp.sum(x * x, axis=1, keepdims=True))
        return x / jnp.maximum(nrm, 1e-12)

    def euclid(x):
        sq = jnp.sum(x * x, axis=1, keepdims=True)
        dd = sq + sq.T - 2.0 * (x @ x.T)
        return jnp.sqrt(jnp.clip(dd, 1e-12))

    if normalize_feature:
        emb1 = normalize(emb1)
        emb2 = normalize(emb2)
    n = emb1.shape[0]
    md = euclid(emb1)
    sim = (label[:, None] == label[None, :]).astype(jnp.float32)
    pos = md - 9999999.0 * (1.0 - sim)
    neg = md + 9999999.0 * sim
    dist_ap = jnp.max(pos, axis=1)
    ap_idx = jnp.argmax(pos, axis=1)
    dist_an = jnp.min(neg, axis=1)
    an_idx = jnp.argmin(neg, axis=1)
    td = jax.nn.log_softmax(jnp.stack([dist_ap, dist_an], axis=1), axis=1)
    if margin is not None:
        return jnp.mean(-margin * td[:, 0] - (1.0 - margin) * td[:, 1])
    mdr = euclid(emb2)
    dist_ap_ref = mdr[jnp.arange(n), ap_idx]
    dist_an_ref = mdr[jnp.arange(n), an_idx]
    tdr = jax.nn.softmax(jnp.stack([dist_ap_ref, dist_an_ref], axis=1), axis=1)
    return jnp.sum(jnp.mean(-tdr * td, axis=0))


if __name__ == "__main__":
    key = jax.random.PRNGKey(0)
    k1, k2, k3, k4 = jax.random.split(key, 4)

    # --- small shapes matching the module's forward -------------------------
    N, D = 8, 32
    emb1 = jax.random.normal(k1, (N, D), dtype=jnp.float32)
    emb2 = jax.random.normal(k2, (N, D), dtype=jnp.float32)
    label = jnp.array([0, 0, 1, 1, 2, 2, 3, 3], dtype=jnp.int32)

    # Default path: margin=None (soft target from emb2), no normalization.
    loss = jax.block_until_ready(soft_triplet_loss(emb1, emb2, label))
    ref = _reference_loss(emb1, emb2, label)
    assert jnp.allclose(loss, ref, atol=1e-4, rtol=1e-4), (float(loss), float(ref))

    # Margin path (emb2 unused, index recovery elided in the kernel).
    loss_m = jax.block_until_ready(soft_triplet_loss(emb1, emb2, label, margin=0.3))
    ref_m = _reference_loss(emb1, emb2, label, margin=0.3)
    assert jnp.allclose(loss_m, ref_m, atol=1e-4, rtol=1e-4), (float(loss_m), float(ref_m))

    # Normalized-feature path against the reference.
    loss_nrm = jax.block_until_ready(
        soft_triplet_loss(emb1, emb2, label, normalize_feature=True))
    ref_nrm = _reference_loss(emb1, emb2, label, normalize_feature=True)
    assert jnp.allclose(loss_nrm, ref_nrm, atol=1e-4, rtol=1e-4), (
        float(loss_nrm), float(ref_nrm))

    # mid_hard path: compile/run sanity (second-hardest positive selection).
    loss_mh = jax.block_until_ready(soft_triplet_loss(emb1, emb2, label, mid_hard=True))
    assert bool(jnp.isfinite(loss_mh))

    # --- multi-tile grid (N > TM) exercises the row-tiled pipeline ----------
    N2, D2 = 256, 64
    e1b = jax.random.normal(k3, (N2, D2), dtype=jnp.float32)
    e2b = jax.random.normal(k4, (N2, D2), dtype=jnp.float32)
    lab_b = (jnp.arange(N2, dtype=jnp.int32) % 32)
    loss_b = jax.block_until_ready(soft_triplet_loss(e1b, e2b, lab_b))
    ref_b = _reference_loss(e1b, e2b, lab_b)
    assert jnp.allclose(loss_b, ref_b, atol=1e-3, rtol=1e-3), (float(loss_b), float(ref_b))
    loss_bm = jax.block_until_ready(soft_triplet_loss(e1b, e2b, lab_b, margin=0.3))
    ref_bm = _reference_loss(e1b, e2b, lab_b, margin=0.3)
    assert jnp.allclose(loss_bm, ref_bm, atol=1e-3, rtol=1e-3), (float(loss_bm), float(ref_bm))

    print("KERNEL_OK")
</pallas_src>

<mosaic_0001>
module attributes {stable_mosaic.version = 11 : i64} {
  func.func @_soft_triplet_kernel(%arg0: i32, %arg1: memref<8x1xi32, #tpu.memory_space<vmem>>, %arg2: memref<1x8xi32, #tpu.memory_space<vmem>>, %arg3: memref<8x1xf32, #tpu.memory_space<vmem>>, %arg4: memref<1x8xf32, #tpu.memory_space<vmem>>, %arg5: memref<8x32xf32, #tpu.memory_space<vmem>>, %arg6: memref<8x1xf32, #tpu.memory_space<vmem>>, %arg7: memref<1x8xf32, #tpu.memory_space<vmem>>, %arg8: memref<8x32xf32, #tpu.memory_space<vmem>>, %arg9: memref<8x1xf32, #tpu.memory_space<vmem>>) attributes {dimension_semantics = [#tpu.dimension_semantics<parallel>], iteration_bounds = array<i64: 1>, scalar_prefetch = 0 : i64, scratch_operands = 0 : i64, tpu.core_type = #tpu.core_type<tc>, window_params = [{transform_indices = @transform_0, window_bounds = array<i64: 8, 1>}, {pipeline_mode = #tpu.pipeline_mode<synchronous>, transform_indices = @transform_1, window_bounds = array<i64: 1, 8>}, {transform_indices = @transform_2, window_bounds = array<i64: 8, 1>}, {pipeline_mode = #tpu.pipeline_mode<synchronous>, transform_indices = @transform_3, window_bounds = array<i64: 1, 8>}, {pipeline_mode = #tpu.pipeline_mode<synchronous>, transform_indices = @transform_4, window_bounds = array<i64: 8, 32>}, {transform_indices = @transform_5, window_bounds = array<i64: 8, 1>}, {pipeline_mode = #tpu.pipeline_mode<synchronous>, transform_indices = @transform_6, window_bounds = array<i64: 1, 8>}, {pipeline_mode = #tpu.pipeline_mode<synchronous>, transform_indices = @transform_7, window_bounds = array<i64: 8, 32>}, {transform_indices = @transform_8, window_bounds = array<i64: 8, 1>}]} {
    %c8_i32 = arith.constant 8 : i32
    %0 = arith.muli %arg0, %c8_i32 : i32
    %1 = tpu.assume_multiple %0, 8 : i32
    %2 = arith.index_cast %1 : i32 to index
    %c0 = arith.constant 0 : index
    %3 = vector.load %arg5[%2, %c0] : memref<8x32xf32, #tpu.memory_space<vmem>>, vector<8x32xf32>
    %c0_0 = arith.constant 0 : index
    %c0_1 = arith.constant 0 : index
    %4 = vector.load %arg5[%c0_0, %c0_1] : memref<8x32xf32, #tpu.memory_space<vmem>>, vector<8x32xf32>
    %cst = arith.constant dense<0.000000e+00> : vector<8x8xf32>
    %5 = tpu.matmul %3, %4, %cst {dimension_numbers = #tpu.dot_dimension_numbers<[1], [1], [0], [0], [0, 0, 1, 0], [], []>} : vector<8x32xf32>, vector<8x32xf32>, vector<8x8xf32> -> vector<8x8xf32>
    %c0_2 = arith.constant 0 : index
    %c0_3 = arith.constant 0 : index
    %6 = vector.load %arg3[%c0_2, %c0_3] : memref<8x1xf32, #tpu.memory_space<vmem>>, vector<8x1xf32>
    %c0_4 = arith.constant 0 : index
    %c0_5 = arith.constant 0 : index
    %7 = vector.load %arg4[%c0_4, %c0_5] : memref<1x8xf32, #tpu.memory_space<vmem>>, vector<1x8xf32>
    %8 = vector.broadcast %6 : vector<8x1xf32> to vector<8x8xf32>
    %9 = vector.broadcast %7 : vector<1x8xf32> to vector<8x8xf32>
    %10 = arith.addf %8, %9 : vector<8x8xf32>
    %cst_6 = arith.constant 2.000000e+00 : f32
    %11 = vector.broadcast %cst_6 : f32 to vector<8x8xf32>
    %12 = arith.mulf %11, %5 : vector<8x8xf32>
    %13 = arith.subf %10, %12 : vector<8x8xf32>
    %c0_7 = arith.constant 0 : index
    %c0_8 = arith.constant 0 : index
    %14 = vector.load %arg1[%c0_7, %c0_8] : memref<8x1xi32, #tpu.memory_space<vmem>>, vector<8x1xi32>
    %c0_9 = arith.constant 0 : index
    %c0_10 = arith.constant 0 : index
    %15 = vector.load %arg2[%c0_9, %c0_10] : memref<1x8xi32, #tpu.memory_space<vmem>>, vector<1x8xi32>
    %16 = vector.broadcast %14 : vector<8x1xi32> to vector<8x8xi32>
    %17 = vector.broadcast %15 : vector<1x8xi32> to vector<8x8xi32>
    %18 = arith.cmpi eq, %16, %17 : vector<8x8xi32>
    %19 = tpu.iota {dimensions = array<i32: 1>} : vector<8x8xi32>
    %cst_11 = arith.constant -1.000000e+30 : f32
    %20 = vector.broadcast %cst_11 : f32 to vector<8x8xf32>
    %21 = arith.select %18, %13, %20 : vector<8x8xi1>, vector<8x8xf32>
    %cst_12 = arith.constant 1.000000e+30 : f32
    %22 = vector.broadcast %cst_12 : f32 to vector<8x8xf32>
    %23 = arith.select %18, %22, %13 : vector<8x8xi1>, vector<8x8xf32>
    %cst_13 = arith.constant dense<0xFF800000> : vector<8xf32>
    %24 = vector.multi_reduction <maximumf>, %21, %cst_13 [1] : vector<8x8xf32> to vector<8xf32>
    %25 = vector.shape_cast %24 : vector<8xf32> to vector<8x1xf32>
    %26 = vector.broadcast %25 : vector<8x1xf32> to vector<8x8xf32>
    %27 = arith.cmpf oeq, %21, %26 : vector<8x8xf32>
    %c8_i32_14 = arith.constant 8 : i32
    %28 = vector.broadcast %c8_i32_14 : i32 to vector<8x8xi32>
    %29 = arith.select %27, %19, %28 : vector<8x8xi1>, vector<8x8xi32>
    %cst_15 = arith.constant dense<2147483647> : vector<8xi32>
    %30 = vector.multi_reduction <minsi>, %29, %cst_15 [1] : vector<8x8xi32> to vector<8xi32>
    %31 = vector.shape_cast %30 : vector<8xi32> to vector<8x1xi32>
    %cst_16 = arith.constant dense<0x7F800000> : vector<8xf32>
    %32 = vector.multi_reduction <minimumf>, %23, %cst_16 [1] : vector<8x8xf32> to vector<8xf32>
    %33 = vector.shape_cast %32 : vector<8xf32> to vector<8x1xf32>
    %34 = vector.broadcast %33 : vector<8x1xf32> to vector<8x8xf32>
    %35 = arith.cmpf oeq, %23, %34 : vector<8x8xf32>
    %c8_i32_17 = arith.constant 8 : i32
    %36 = vector.broadcast %c8_i32_17 : i32 to vector<8x8xi32>
    %37 = arith.select %35, %19, %36 : vector<8x8xi1>, vector<8x8xi32>
    %cst_18 = arith.constant dense<2147483647> : vector<8xi32>
    %38 = vector.multi_reduction <minsi>, %37, %cst_18 [1] : vector<8x8xi32> to vector<8xi32>
    %39 = vector.shape_cast %38 : vector<8xi32> to vector<8x1xi32>
    %cst_19 = arith.constant 9.99999996E-13 : f32
    %40 = vector.broadcast %cst_19 : f32 to vector<8x1xf32>
    %41 = arith.maximumf %25, %40 : vector<8x1xf32>
    %42 = math.sqrt %41 : vector<8x1xf32>
    %cst_20 = arith.constant 9.99999996E-13 : f32
    %43 = vector.broadcast %cst_20 : f32 to vector<8x1xf32>
    %44 = arith.maximumf %33, %43 : vector<8x1xf32>
    %45 = math.sqrt %44 : vector<8x1xf32>
    %46 = arith.maximumf %42, %45 : vector<8x1xf32>
    %47 = arith.subf %42, %46 : vector<8x1xf32>
    %48 = math.exp %47 : vector<8x1xf32>
    %49 = arith.subf %45, %46 : vector<8x1xf32>
    %50 = math.exp %49 : vector<8x1xf32>
    %51 = arith.addf %48, %50 : vector<8x1xf32>
    %52 = math.log %51 : vector<8x1xf32>
    %53 = arith.addf %46, %52 : vector<8x1xf32>
    %54 = arith.subf %42, %53 : vector<8x1xf32>
    %55 = arith.subf %45, %53 : vector<8x1xf32>
    %56 = arith.index_cast %1 : i32 to index
    %c0_21 = arith.constant 0 : index
    %57 = vector.load %arg8[%56, %c0_21] : memref<8x32xf32, #tpu.memory_space<vmem>>, vector<8x32xf32>
    %c0_22 = arith.constant 0 : index
    %c0_23 = arith.constant 0 : index
    %58 = vector.load %arg8[%c0_22, %c0_23] : memref<8x32xf32, #tpu.memory_space<vmem>>, vector<8x32xf32>
    %cst_24 = arith.constant dense<0.000000e+00> : vector<8x8xf32>
    %59 = tpu.matmul %57, %58, %cst_24 {dimension_numbers = #tpu.dot_dimension_numbers<[1], [1], [0], [0], [0, 0, 1, 0], [], []>} : vector<8x32xf32>, vector<8x32xf32>, vector<8x8xf32> -> vector<8x8xf32>
    %c0_25 = arith.constant 0 : index
    %c0_26 = arith.constant 0 : index
    %60 = vector.load %arg6[%c0_25, %c0_26] : memref<8x1xf32, #tpu.memory_space<vmem>>, vector<8x1xf32>
    %c0_27 = arith.constant 0 : index
    %c0_28 = arith.constant 0 : index
    %61 = vector.load %arg7[%c0_27, %c0_28] : memref<1x8xf32, #tpu.memory_space<vmem>>, vector<1x8xf32>
    %62 = vector.broadcast %60 : vector<8x1xf32> to vector<8x8xf32>
    %63 = vector.broadcast %61 : vector<1x8xf32> to vector<8x8xf32>
    %64 = arith.addf %62, %63 : vector<8x8xf32>
    %cst_29 = arith.constant 2.000000e+00 : f32
    %65 = vector.broadcast %cst_29 : f32 to vector<8x8xf32>
    %66 = arith.mulf %65, %59 : vector<8x8xf32>
    %67 = arith.subf %64, %66 : vector<8x8xf32>
    %68 = vector.broadcast %31 : vector<8x1xi32> to vector<8x8xi32>
    %69 = arith.cmpi eq, %19, %68 : vector<8x8xi32>
    %cst_30 = arith.constant 0.000000e+00 : f32
    %70 = vector.broadcast %cst_30 : f32 to vector<8x8xf32>
    %71 = arith.select %69, %67, %70 : vector<8x8xi1>, vector<8x8xf32>
    %cst_31 = arith.constant dense<0.000000e+00> : vector<8xf32>
    %72 = vector.multi_reduction <add>, %71, %cst_31 [1] : vector<8x8xf32> to vector<8xf32>
    %73 = vector.shape_cast %72 : vector<8xf32> to vector<8x1xf32>
    %74 = vector.broadcast %39 : vector<8x1xi32> to vector<8x8xi32>
    %75 = arith.cmpi eq, %19, %74 : vector<8x8xi32>
    %cst_32 = arith.constant 0.000000e+00 : f32
    %76 = vector.broadcast %cst_32 : f32 to vector<8x8xf32>
    %77 = arith.select %75, %67, %76 : vector<8x8xi1>, vector<8x8xf32>
    %cst_33 = arith.constant dense<0.000000e+00> : vector<8xf32>
    %78 = vector.multi_reduction <add>, %77, %cst_33 [1] : vector<8x8xf32> to vector<8xf32>
    %79 = vector.shape_cast %78 : vector<8xf32> to vector<8x1xf32>
    %cst_34 = arith.constant 9.99999996E-13 : f32
    %80 = vector.broadcast %cst_34 : f32 to vector<8x1xf32>
    %81 = arith.maximumf %73, %80 : vector<8x1xf32>
    %82 = math.sqrt %81 : vector<8x1xf32>
    %cst_35 = arith.constant 9.99999996E-13 : f32
    %83 = vector.broadcast %cst_35 : f32 to vector<8x1xf32>
    %84 = arith.maximumf %79, %83 : vector<8x1xf32>
    %85 = math.sqrt %84 : vector<8x1xf32>
    %86 = arith.maximumf %82, %85 : vector<8x1xf32>
    %87 = arith.subf %82, %86 : vector<8x1xf32>
    %88 = math.exp %87 : vector<8x1xf32>
    %89 = arith.subf %85, %86 : vector<8x1xf32>
    %90 = math.exp %89 : vector<8x1xf32>
    %91 = arith.addf %88, %90 : vector<8x1xf32>
    %92 = tpu.reciprocal %91 {approx = true} : vector<8x1xf32> -> vector<8x1xf32>
    %93 = arith.mulf %91, %92 : vector<8x1xf32>
    %cst_36 = arith.constant 2.000000e+00 : f32
    %94 = vector.broadcast %cst_36 : f32 to vector<8x1xf32>
    %95 = arith.subf %94, %93 : vector<8x1xf32>
    %96 = arith.mulf %92, %95 : vector<8x1xf32>
    %97 = arith.mulf %88, %96 : vector<8x1xf32>
    %cst_37 = arith.constant 0.000000e+00 : f32
    %98 = vector.broadcast %cst_37 : f32 to vector<8x1xf32>
    %99 = arith.subf %98, %97 : vector<8x1xf32>
    %100 = arith.mulf %99, %54 : vector<8x1xf32>
    %101 = arith.mulf %90, %96 : vector<8x1xf32>
    %102 = arith.mulf %101, %55 : vector<8x1xf32>
    %103 = arith.subf %100, %102 : vector<8x1xf32>
    %c0_38 = arith.constant 0 : index
    %c0_39 = arith.constant 0 : index
    %104 = vector.load %arg9[%c0_38, %c0_39] : memref<8x1xf32, #tpu.memory_space<vmem>>, vector<8x1xf32>
    tpu.vector_store %arg9[%c0_38, %c0_39], %103 {strides = array<i32>} : memref<8x1xf32, #tpu.memory_space<vmem>>, vector<8x1xf32>,
    return
  }
  func.func @transform_0(%arg0: i32) -> (i32, i32) {
    %c0_i32 = arith.constant 0 : i32
    %c0_i32_0 = arith.constant 0 : i32
    return %arg0, %c0_i32 : i32, i32
  }
  func.func @transform_1(%arg0: i32) -> (i32, i32) {
    %c0_i32 = arith.constant 0 : i32
    %c0_i32_0 = arith.constant 0 : i32
    %c0_i32_1 = arith.constant 0 : i32
    return %c0_i32, %c0_i32_0 : i32, i32
  }
  func.func @transform_2(%arg0: i32) -> (i32, i32) {
    %c0_i32 = arith.constant 0 : i32
    %c0_i32_0 = arith.constant 0 : i32
    return %arg0, %c0_i32 : i32, i32
  }
  func.func @transform_3(%arg0: i32) -> (i32, i32) {
    %c0_i32 = arith.constant 0 : i32
    %c0_i32_0 = arith.constant 0 : i32
    %c0_i32_1 = arith.constant 0 : i32
    return %c0_i32, %c0_i32_0 : i32, i32
  }
  func.func @transform_4(%arg0: i32) -> (i32, i32) {
    %c0_i32 = arith.constant 0 : i32
    %c0_i32_0 = arith.constant 0 : i32
    %c0_i32_1 = arith.constant 0 : i32
    return %c0_i32, %c0_i32_0 : i32, i32
  }
  func.func @transform_5(%arg0: i32) -> (i32, i32) {
    %c0_i32 = arith.constant 0 : i32
    %c0_i32_0 = arith.constant 0 : i32
    return %arg0, %c0_i32 : i32, i32
  }
  func.func @transform_6(%arg0: i32) -> (i32, i32) {
    %c0_i32 = arith.constant 0 : i32
    %c0_i32_0 = arith.constant 0 : i32
    %c0_i32_1 = arith.constant 0 : i32
    return %c0_i32, %c0_i32_0 : i32, i32
  }
  func.func @transform_7(%arg0: i32) -> (i32, i32) {
    %c0_i32 = arith.constant 0 : i32
    %c0_i32_0 = arith.constant 0 : i32
    %c0_i32_1 = arith.constant 0 : i32
    return %c0_i32, %c0_i32_0 : i32, i32
  }
  func.func @transform_8(%arg0: i32) -> (i32, i32) {
    %c0_i32 = arith.constant 0 : i32
    %c0_i32_0 = arith.constant 0 : i32
    return %arg0, %c0_i32 : i32, i32
  }
}

</mosaic_0001>

<bundles_post_ra>
// kernel: tpu_custom_call.1
= control target key start
LH: loop header
LB: loop body
LE: loop exit
PB: predicated region body
PF: predicated region fallthrough
CT: control target
= control target key end

     0   :  { %vm33_vm0 = vcmask 261120   ;;  %v401_v0 = vmov 0.0   ;;  %vm402_vm1 = vmmov 0   ;;  %v403_v3 = vmov 0   ;;  %s486_s4 = inlined_call_operand.vmem [shape: f32[8,32], index: 4, kind: input, shape index: {}]   ;;  %s487_s2 = inlined_call_operand.vmem [shape: f32[8,1], index: 2, kind: input, shape index: {}]   ;;  %s488_s0 = inlined_call_operand.vmem [shape: s32[8,1], index: 0, kind: input, shape index: {}]   ;;  %s489_s3 = inlined_call_operand.vmem [shape: f32[1,8], index: 3, kind: input, shape index: {}]   ;;  %s490_s1 = inlined_call_operand.vmem [shape: s32[1,8], index: 1, kind: input, shape index: {}]   ;;  %s491_s7 = inlined_call_operand.vmem [shape: f32[8,32], index: 7, kind: input, shape index: {}]   ;;  %s492_s5 = inlined_call_operand.vmem [shape: f32[8,1], index: 5, kind: input, shape index: {}]   ;;  %s493_s6 = inlined_call_operand.vmem [shape: f32[1,8], index: 6, kind: input, shape index: {}]   ;;  %s494_s8 = inlined_call_operand.vmem [shape: f32[8,1], index: 8, kind: output, shape index: {}]  }
   0x1   :  { %366 = vmatprep.subr.mxu0 %v401_v0  ;;  %v32_v1 = vld [vmem:[%s486_s4] sm:$0xff]  ;;  %368 = vmatprep.mubr.msk.f32.mxu0 %vm402_vm1, %v401_v0  ;;  %vm140_vm2 = vcmask 64512   ;;  %v136_v19 = vlaneseq }
   0x2   :  { %v110_v2 = vld [vmem:[%s487_s2] sm:$0xff]  ;;  %367 = vmatpush3.xpose.msk.msra.mxu0 %vm33_vm0, %v32_v1  ;;  %379 = vset.pattern.permute.xlu0 %v403_v3 }
   0x3   :  { %114 = vperm.xlu0 %379, %v110_v2   ;;  %371 = vmatprep.subr.mxu1 %v401_v0  ;;  %v126_v4 = vld [vmem:[%s488_s0] sm:$0xff]  ;;  %v137_v20 = vand.u32 127, %v136_v19 }
   0x4   :  { %373 = vmatprep.mubr.msk.f32.mxu1 %vm402_vm1, %v401_v0  ;;  %380 = vset.pattern.permute.xlu1 %v403_v3  ;;  %v357_v6 = vld [vmem:[%s489_s3] ss:$0 sm:$0xff] }
   0x5   :  { %369 = vmatmul.mubr.msk.f32.vlgmr.msra.gmra.mrb[0].mxu0 %vm33_vm0, %v32_v1  ;;  %v358_v9 = vld [vmem:[%s490_s1] ss:$0 sm:$0xff] }
   0x6   :  { %v212_v18 = vld [vmem:[%s491_s7] sm:$0xff] }
   0x7   :  { %129 = vperm.xlu0 %379, %v126_v4   ;;  %372 = vmatpush3.xpose.msk.msra.mxu1 %vm33_vm0, %v212_v18  ;;  %v289_v39 = vld [vmem:[%s492_s5] sm:$0xff] }
   0x8   :  { %v361_v50 = vld [vmem:[%s493_s6] ss:$0 sm:$0xff] }
   0xa   :  { %374 = vmatmul.mubr.msk.f32.vlgmr.msra.gmra.mrb[0].mxu1 %vm33_vm0, %v212_v18 }
  0x82   :  { %v115_v5 = vpop.permute.xlu0 %114 }
  0x83   :  { %v123_v7 = vadd.f32 %v357_v6, %v115_v5 }
  0x86   :  { %v130_v10 = vpop.permute.xlu0 %129 }
  0x87   :  { %vm135_vm3 = vcmp.eq.s32.totalorder %v130_v10, %v358_v9 }
  0xd8   :  { %v106_v8 = vpop.f32.mrb[0].mxu0 }
  0xd9   :  { %v124_v11 = vmul.f32 2.0, %v106_v8  ;;  %v370_v12 = vpop.f32.mrb[1].mxu0 }
  0xdb   :  { %v125_v13 = vsub.f32 %v123_v7, %v124_v11 }
  0xdd   :  { %v138_v14 = vsel %vm135_vm3, %v125_v13, -1e+30  ;;  %v139_v16 = vsel %vm135_vm3, 1e+30, %v125_v13  ;;  %v285_v40 = vpop.f32.mrb[0].mxu1 }
  0xde   :  { %v141_v15 = vsel %vm140_vm2, %v138_v14, -inf  ;;  %v161_v17 = vsel %vm140_vm2, %v139_v16, inf  ;;  %v375_v41 = vpop.f32.mrb[1].mxu1  ;;  %v303_v51 = vmul.f32 2.0, %v285_v40 }
  0xdf   :  { %142 = vmax.xlane.f32.xlu1 %v141_v15 }
  0xe3   :  { %162 = vmin.xlane.f32.xlu1 %v161_v17 }
 0x16c   :  { %v143_v21 = vpop.xlane.xlu1 %142 }
 0x16d   :  { %vm144_vm4 = vcmp.eq.f32.partialorder %v138_v14, %v143_v21  ;;  %v181_v62 = vmax.f32 %v143_v21, 1e-12 }
 0x16e   :  { %v145_v22 = vsel %vm144_vm4, %v137_v20, 8 }
 0x16f   :  { %v146_v24 = vsel %vm140_vm2, %v145_v22, 2147483647  ;;  %vm184_vm11 = vcmp.eq.f32.partialorder %v181_v62, inf  ;;  %v187_v10 = vand.u32 2147483648, %v181_v62  ;;  %vm186_vm13 = vcmp.eq.f32.partialorder %v181_v62, 0.0 }
 0x170   :  { %v163_v23 = vpop.xlane.xlu1 %162  ;;  %v148_v25 = vshra.s32 %v146_v24, 16  ;;  %v147_v31 = vand.u32 65535, %v146_v24 }
 0x171   :  { %vm164_vm5 = vcmp.eq.f32.partialorder %v139_v16, %v163_v23  ;;  %v189_v61 = vmax.f32 %v163_v23, 1e-12 }
 0x172   :  { %v165_v26 = vsel %vm164_vm5, %v137_v20, 8  ;;  %v150_v27 = vcvt.s32.f32 %v148_v25  ;;  %v149_v34 = vcvt.s32.f32 %v147_v31 }
 0x173   :  { %v166_v28 = vsel %vm140_vm2, %v165_v26, 2147483647  ;;  %381 = vrsqrt.f32 %v189_v61  ;;  %vm192_vm10 = vcmp.eq.f32.partialorder %v189_v61, inf  ;;  %v195_v6 = vand.u32 2147483648, %v189_v61 }
 0x174   :  { %v168_v29 = vshra.s32 %v166_v28, 16  ;;  %151 = vmin.xlane.f32.xlu0 %v150_v27  ;;  %v167_v32 = vand.u32 65535, %v166_v28  ;;  %383 = vrsqrt.f32 %v181_v62  ;;  %vm194_vm12 = vcmp.eq.f32.partialorder %v189_v61, 0.0 }
 0x176   :  { %v170_v30 = vcvt.s32.f32 %v168_v29  ;;  %v169_v37 = vcvt.s32.f32 %v167_v32 }
 0x178   :  { %171 = vmin.xlane.f32.xlu1 %v170_v30 }
 0x17d   :  { %v382_v63 = vpop.eup %381 }
 0x17e   :  { %v384_v0 = vpop.eup %383  ;;  %v191_v1 = vmul.f32 %v382_v63, %v189_v61 }
 0x17f   :  { %v183_v2 = vmul.f32 %v384_v0, %v181_v62 }
 0x180   :  { %v193_v3 = vsel %vm192_vm10, %v189_v61, %v191_v1 }
 0x181   :  { %v185_v9 = vsel %vm184_vm11, %v181_v62, %v183_v2  ;;  %v196_v11 = vsel %vm194_vm12, %v195_v6, %v193_v3 }
 0x182   :  { %v188_v12 = vsel %vm186_vm13, %v187_v10, %v185_v9 }
 0x183   :  { %v197_v13 = vmax.f32 %v188_v12, %v196_v11 }
 0x185   :  { %v198_v14 = vsub.f32 %v188_v12, %v197_v13  ;;  %v201_v15 = vsub.f32 %v196_v11, %v197_v13 }
 0x187   :  { %v199_v18 = vmul.f32 1.442695, %v198_v14 }
 0x201   :  { %v152_v33 = vpop.xlane.xlu0 %151 }
 0x202   :  { %vm153_vm6 = vcmp.eq.f32.partialorder %v150_v27, %v152_v33  ;;  %v158_v43 = vcvt.f32.s32 %v152_v33 }
 0x203   :  { %v154_v35 = vsel %vm153_vm6, %v149_v34, inf }
 0x204   :  { %155 = vmin.xlane.f32.xlu1 %v154_v35  ;;  %v159_v48 = vshll.u32 %v158_v43, 16 }
 0x205   :  { %v172_v36 = vpop.xlane.xlu1 %171 }
 0x206   :  { %vm173_vm7 = vcmp.eq.f32.partialorder %v170_v30, %v172_v36  ;;  %v178_v44 = vcvt.f32.s32 %v172_v36 }
 0x207   :  { %v174_v38 = vsel %vm173_vm7, %v169_v37, inf }
 0x208   :  { %175 = vmin.xlane.f32.xlu1 %v174_v38  ;;  %v179_v49 = vshll.u32 %v178_v44, 16 }
 0x219   :  { %293 = vperm.xlu1 %380, %v289_v39  }
 0x291   :  { %v156_v42 = vpop.xlane.xlu1 %155 }
 0x292   :  { %v157_v45 = vcvt.f32.s32 %v156_v42 }
 0x294   :  { %v160_v52 = vadd.s32 %v159_v48, %v157_v45 }
 0x295   :  { %v176_v46 = vpop.xlane.xlu1 %175 }
 0x296   :  { %v177_v47 = vcvt.f32.s32 %v176_v46  ;;  %vm305_vm9 = vcmp.eq.s32.totalorder %v137_v20, %v160_v52 }
 0x298   :  { %v180_v53 = vadd.s32 %v179_v49, %v177_v47 }
 0x299   :  { %v294_v54 = vpop.permute.xlu1 %293 }
 0x29a   :  { %v302_v55 = vadd.f32 %v361_v50, %v294_v54  ;;  %vm310_vm8 = vcmp.eq.s32.totalorder %v137_v20, %v180_v53  ;;  %v202_v20 = vmul.f32 1.442695, %v201_v15 }
 0x29c   :  { %v304_v56 = vsub.f32 %v302_v55, %v303_v51 }
 0x29e   :  { %v311_v57 = vsel %vm310_vm8, %v304_v56, 0.0  ;;  %v306_v58 = vsel %vm305_vm9, %v304_v56, 0.0 }
 0x29f   :  { %v312_v59 = vsel %vm140_vm2, %v311_v57, 0.0  ;;  %v307_v60 = vsel %vm140_vm2, %v306_v58, 0.0  ;;  %vm349_vm2 = vcmask 7168  }
 0x2a0   :  { %313 = vadd.xlane.f32.xlu0 %v312_v59  ;;  %308 = vadd.xlane.f32.xlu1 %v307_v60 }
 0x32d   :  { %v314_v4 = vpop.xlane.xlu0 %313  ;;  %v309_v5 = vpop.xlane.xlu1 %308 }
 0x32e   :  { %v323_v7 = vmax.f32 %v314_v4, 1e-12  ;;  %v315_v8 = vmax.f32 %v309_v5, 1e-12 }
 0x330   :  { %385 = vrsqrt.f32 %v323_v7  ;;  %vm326_vm14 = vcmp.eq.f32.partialorder %v323_v7, inf  ;;  %v329_v21 = vand.u32 2147483648, %v323_v7  ;;  %vm328_vm15 = vcmp.eq.f32.partialorder %v323_v7, 0.0 }
 0x331   :  { %387 = vrsqrt.f32 %v315_v8  ;;  %vm318_vm0 = vcmp.eq.f32.partialorder %v315_v8, inf  ;;  %v321_v24 = vand.u32 2147483648, %v315_v8  ;;  %vm320_vm1 = vcmp.eq.f32.partialorder %v315_v8, 0.0 }
 0x332   :  { %389 = vpow2.f32 %v199_v18 }
 0x333   :  { %391 = vpow2.f32 %v202_v20 }
 0x33a   :  { %v386_v16 = vpop.eup %385 }
 0x33b   :  { %v388_v17 = vpop.eup %387  ;;  %v325_v19 = vmul.f32 %v386_v16, %v323_v7 }
 0x33c   :  { %v317_v22 = vmul.f32 %v388_v17, %v315_v8  ;;  %v390_v33 = vpop.eup %389 }
 0x33d   :  { %v327_v23 = vsel %vm326_vm14, %v323_v7, %v325_v19  ;;  %v392_v34 = vpop.eup %391 }
 0x33e   :  { %v330_v25 = vsel %vm328_vm15, %v329_v21, %v327_v23  ;;  %v319_v26 = vsel %vm318_vm0, %v315_v8, %v317_v22  ;;  %v204_v35 = vadd.f32 %v392_v34, %v390_v33 }
 0x33f   :  { %v322_v27 = vsel %vm320_vm1, %v321_v24, %v319_v26 }
 0x340   :  { %v331_v28 = vmax.f32 %v322_v27, %v330_v25 }
 0x342   :  { %v332_v29 = vsub.f32 %v322_v27, %v331_v28  ;;  %v335_v30 = vsub.f32 %v330_v25, %v331_v28 }
 0x344   :  { %v333_v31 = vmul.f32 1.442695, %v332_v29  ;;  %v336_v32 = vmul.f32 1.442695, %v335_v30 }
 0x346   :  { %393 = vpow2.f32 %v333_v31 }
 0x347   :  { %395 = vpow2.f32 %v336_v32 }
 0x348   :  { %397 = vlog2.f32 %v204_v35 }
 0x350   :  { %v394_v36 = vpop.eup %393 }
 0x351   :  { %v396_v37 = vpop.eup %395 }
 0x352   :  { %v338_v38 = vadd.f32 %v396_v37, %v394_v36  ;;  %v398_v39 = vpop.eup %397 }
 0x353   :  { %v206_v41 = vmul.f32 0.6931472, %v398_v39 }
 0x354   :  { %399 = vrcp.f32 %v338_v38 }
 0x355   :  { %v207_v44 = vadd.f32 %v206_v41, %v197_v13 }
 0x357   :  { %v208_v48 = vsub.f32 %v188_v12, %v207_v44  ;;  %v209_v49 = vsub.f32 %v196_v11, %v207_v44 }
 0x35e   :  { %v400_v40 = vpop.eup %399 }
 0x35f   :  { %v340_v42 = vmul.f32 %v400_v40, %v338_v38 }
 0x361   :  { %v341_v43 = vsub.f32 2.0, %v340_v42 }
 0x363   :  { %v342_v45 = vmul.f32 %v400_v40, %v341_v43 }
 0x365   :  { %v343_v46 = vmul.f32 %v394_v36, %v342_v45  ;;  %v346_v47 = vmul.f32 %v396_v37, %v342_v45 }
 0x367   :  { %v344_v50 = vsub.f32 0.0, %v343_v46  ;;  %v347_v52 = vmul.f32 %v346_v47, %v209_v49 }
 0x369   :  { %v345_v51 = vmul.f32 %v344_v50, %v208_v48 }
 0x36b   :  { %v348_v53 = vsub.f32 %v345_v51, %v347_v52 }
 0x36d   :  { %350 = vst.msk [vmem:[%s494_s8] sm:$0xff] %vm349_vm2, %v348_v53 }

</bundles_post_ra>
